<compile_context>
chip_gen: v6e
topology: v6e:2x2x1
jax: 0.10.0
libtpu: 0.0.40
codegen_flags: <defaults>
</compile_context>

<pallas_src>
import functools

import jax
import jax.numpy as jnp
import numpy as np
from jax.experimental import pallas as pl
from jax.experimental.pallas import tpu as pltpu

DROPOUT_P = 0.2


def _round_up(x, m):
    return (x + m - 1) // m * m


def _pick_tile(n_pad, desired):
    """Largest multiple of 128 that divides n_pad and is <= desired (>= 128)."""
    best = 128
    t = 128
    cap = min(desired, n_pad)
    while t <= cap:
        if n_pad % t == 0:
            best = t
        t += 128
    return best


def _choose_tiles(n_pad, d_in, d_out_pad, sup_itemsize):
    """Pick (tm, tk, x_resident, vmem_limit) within a v7x-safe VMEM budget."""
    VMEM_BUDGET = 44 * 1024 * 1024  # v7x has 64 MiB physical VMEM per TC

    # >= 2 output-row tiles when possible so both v7x TensorCores get work.
    tm_cap = 1024
    if n_pad >= 256:
        tm_cap = min(tm_cap, n_pad // 2)
    tm = _pick_tile(n_pad, tm_cap)
    tk = _pick_tile(n_pad, 2048)

    # Keep dropout(x) (bf16) fully resident if it is small.
    x_resident = n_pad * d_in * 2 <= 4 * 1024 * 1024

    def vmem_bytes(tm_, tk_):
        x_vmem = n_pad * d_in * 2 if x_resident else 2 * tk_ * d_in * 2
        return (2 * tm_ * tk_ * sup_itemsize      # support tiles, double-buffered
                + x_vmem                          # dropout(x)
                + 2 * tm_ * d_out_pad * 4         # output tiles, double-buffered
                + tm_ * d_in * 4                  # f32 accumulator
                + 2 * d_in * d_out_pad * 4        # weight (resident)
                + 2 * d_out_pad * 4)              # bias

    # Shrink tk first (accumulator only grows with tm), then tm, to fit budget.
    while vmem_bytes(tm, tk) > VMEM_BUDGET and tk > 128:
        tk = _pick_tile(n_pad, tk - 128)
    while vmem_bytes(tm, tk) > VMEM_BUDGET and tm > 128:
        tm = _pick_tile(n_pad, tm - 128)

    vmem_limit = int(min(max(vmem_bytes(tm, tk) + (4 << 20), 32 << 20), 48 << 20))
    return tm, tk, x_resident, vmem_limit


def gcn_kernel(s_ref, x_ref, w_ref, b_ref, out_ref, acc_ref, *, x_resident, tk):
    """out[i_tile] = relu( (sum_k S[i_tile,k_tile] @ Xd[k_tile]) @ W + b )."""
    k = pl.program_id(1)

    @pl.when(k == 0)
    def _():
        acc_ref[...] = jnp.zeros_like(acc_ref)

    # Cast the support tile to bf16 *inside* the kernel (saves a full N x N
    # wrapper-side cast+copy pass over the largest array).
    s_blk = s_ref[...].astype(jnp.bfloat16)
    if x_resident:
        # x is fully resident; slice out this reduction tile's rows.
        x_blk = x_ref[pl.ds(pl.multiple_of(k * tk, tk), tk), :]
    else:
        x_blk = x_ref[...]

    acc_ref[...] += jnp.dot(s_blk, x_blk, preferred_element_type=jnp.float32)

    @pl.when(k == pl.num_programs(1) - 1)
    def _():
        # Epilogue stays in f32: keep the precision gained by f32 accumulation.
        out = jnp.dot(acc_ref[...], w_ref[...], preferred_element_type=jnp.float32)
        out = out + b_ref[...]
        out_ref[...] = jnp.maximum(out, jnp.float32(0.0)).astype(out_ref.dtype)


def graph_convolution(x, support, weight, bias, *, dropout_p=DROPOUT_P,
                      training=True, rng_key=None):
    """Pallas GCN layer: returns (relu(support @ dropout(x) @ W + b), support)."""
    n, d_in = x.shape
    d_out = weight.shape[1]

    # --- inverted dropout (F.dropout train-mode semantics); eval is a no-op ---
    if training and dropout_p > 0.0:
        if rng_key is None:
            # NOTE: fixed mask across calls; pass a fresh rng_key for real training.
            rng_key = jax.random.PRNGKey(0)
        keep = jax.random.bernoulli(rng_key, 1.0 - dropout_p, x.shape)
        x = jnp.where(keep, x * (1.0 / (1.0 - dropout_p)), 0.0)

    # x is tiny (N x d_in): bf16 cast fuses with the dropout pass.
    xd = x.astype(jnp.bfloat16)

    # Support is passed through in the caller's dtype (f32 here); it is cast to
    # bf16 per-tile inside the kernel -- no wrapper-side N x N copy.
    s = support

    # --- padding: only to a multiple of 128, and only when needed ------------
    n_pad = _round_up(n, 128)
    if n_pad != n:
        s = jnp.pad(s, ((0, n_pad - n), (0, n_pad - n)))
        xd = jnp.pad(xd, ((0, n_pad - n), (0, 0)))

    # Pad d_out to a multiple of 128 for lane-dense (unmasked) output stores;
    # weight / bias are tiny so this costs nothing.
    d_out_pad = _round_up(d_out, 128)
    w = weight.astype(jnp.float32)
    b2 = bias.reshape(1, d_out).astype(jnp.float32)
    if d_out_pad != d_out:
        w = jnp.pad(w, ((0, 0), (0, d_out_pad - d_out)))
        b2 = jnp.pad(b2, ((0, 0), (0, d_out_pad - d_out)))

    # --- tile selection (decoupled tm / tk, VMEM-budgeted) --------------------
    sup_itemsize = np.dtype(s.dtype).itemsize
    tm, tk, x_resident, vmem_limit = _choose_tiles(n_pad, d_in, d_out_pad,
                                                   sup_itemsize)
    grid = (n_pad // tm, n_pad // tk)  # (output-row tiles, reduction tiles)

    if x_resident:
        x_spec = pl.BlockSpec((n_pad, d_in), lambda i, k: (0, 0))   # one DMA total
    else:
        x_spec = pl.BlockSpec((tk, d_in), lambda i, k: (k, 0))      # streamed per k

    kernel = functools.partial(gcn_kernel, x_resident=x_resident, tk=tk)

    out = pl.pallas_call(
        kernel,
        out_shape=jax.ShapeDtypeStruct((n_pad, d_out_pad), jnp.float32),
        grid=grid,
        in_specs=[
            pl.BlockSpec((tm, tk), lambda i, k: (i, k)),            # support tile
            x_spec,                                                 # dropout(x)
            pl.BlockSpec((d_in, d_out_pad), lambda i, k: (0, 0)),   # weight
            pl.BlockSpec((1, d_out_pad), lambda i, k: (0, 0)),      # bias row
        ],
        out_specs=pl.BlockSpec((tm, d_out_pad), lambda i, k: (i, 0)),
        scratch_shapes=[pltpu.VMEM((tm, d_in), jnp.float32)],
        compiler_params=pltpu.CompilerParams(
            dimension_semantics=("parallel", "arbitrary"),
            vmem_limit_bytes=vmem_limit,
        ),
    )(s, xd, w, b2)

    # NOTE: padded rows of `out` hold relu(bias); the slice below removes them
    # (do not reuse the padded buffer directly).
    return out[:n, :d_out], support


def glorot_init(key, shape):
    """Glorot & Bengio uniform init, matching the PyTorch module."""
    init_range = np.sqrt(6.0 / (shape[0] + shape[1]))
    return jax.random.uniform(
        key, shape, dtype=jnp.float32, minval=-init_range, maxval=init_range
    )


if __name__ == "__main__":
    # Small synthetic problem: 128 nodes, 64 -> 128 features.
    N, INPUT_DIM, OUTPUT_DIM = 128, 64, 128

    root = jax.random.PRNGKey(0)
    k_x, k_s, k_w, k_drop = jax.random.split(root, 4)

    x = jax.random.normal(k_x, (N, INPUT_DIM), dtype=jnp.float32)

    # Row-normalized dense "support" (adjacency-like) matrix.
    support_raw = jax.random.uniform(k_s, (N, N), dtype=jnp.float32)
    support = support_raw / jnp.sum(support_raw, axis=1, keepdims=True)

    weight = glorot_init(k_w, (INPUT_DIM, OUTPUT_DIM))
    bias = jnp.zeros((OUTPUT_DIM,), dtype=jnp.float32)

    # Train-mode forward (dropout applied).
    out, support_out = graph_convolution(x, support, weight, bias, rng_key=k_drop)
    jax.block_until_ready(out)
    jax.block_until_ready(support_out)
    assert out.shape == (N, OUTPUT_DIM)
    assert support_out.shape == (N, N)
    assert bool(jnp.all(out >= 0.0))  # relu applied

    # Eval-mode correctness check against a pure-JAX reference (bf16 tolerance).
    out_eval, _ = graph_convolution(x, support, weight, bias, training=False)
    jax.block_until_ready(out_eval)
    ref = jnp.maximum(support @ (x @ weight) + bias, 0.0)
    np.testing.assert_allclose(
        np.asarray(out_eval), np.asarray(ref), rtol=2e-2, atol=2e-2
    )

    print("KERNEL_OK")
</pallas_src>

<mosaic_0001>
module attributes {stable_mosaic.version = 11 : i64} {
  func.func @gcn_kernel(%arg0: i32, %arg1: i32, %arg2: memref<128x128xf32, #tpu.memory_space<vmem>>, %arg3: memref<128x64xbf16, #tpu.memory_space<vmem>>, %arg4: memref<64x128xf32, #tpu.memory_space<vmem>>, %arg5: memref<1x128xf32, #tpu.memory_space<vmem>>, %arg6: memref<128x128xf32, #tpu.memory_space<vmem>>, %arg7: memref<128x64xf32, #tpu.memory_space<vmem>>) attributes {dimension_semantics = [#tpu.dimension_semantics<parallel>, #tpu.dimension_semantics<arbitrary>], iteration_bounds = array<i64: 1, 1>, scalar_prefetch = 0 : i64, scratch_operands = 1 : i64, tpu.core_type = #tpu.core_type<tc>, window_params = [{transform_indices = @transform_0, window_bounds = array<i64: 128, 128>}, {pipeline_mode = #tpu.pipeline_mode<synchronous>, transform_indices = @transform_1, window_bounds = array<i64: 128, 64>}, {pipeline_mode = #tpu.pipeline_mode<synchronous>, transform_indices = @transform_2, window_bounds = array<i64: 64, 128>}, {pipeline_mode = #tpu.pipeline_mode<synchronous>, transform_indices = @transform_3, window_bounds = array<i64: 1, 128>}, {transform_indices = @transform_4, window_bounds = array<i64: 128, 128>}]} {
    %c0_i32 = arith.constant 0 : i32
    %0 = arith.cmpi eq, %arg1, %c0_i32 : i32
    %1 = arith.extui %0 : i1 to i32
    %c0_i32_0 = arith.constant 0 : i32
    %2 = arith.cmpi ne, %1, %c0_i32_0 : i32
    scf.if %2 {
      %cst_9 = arith.constant 0.000000e+00 : f32
      %16 = vector.broadcast %cst_9 : f32 to vector<128x64xf32>
      %c0_10 = arith.constant 0 : index
      %c0_11 = arith.constant 0 : index
      %17 = vector.load %arg7[%c0_10, %c0_11] : memref<128x64xf32, #tpu.memory_space<vmem>>, vector<128x64xf32>
      tpu.vector_store %arg7[%c0_10, %c0_11], %16 {strides = array<i32>} : memref<128x64xf32, #tpu.memory_space<vmem>>, vector<128x64xf32>,
    } else {
    }
    %c0 = arith.constant 0 : index
    %c0_1 = arith.constant 0 : index
    %3 = vector.load %arg2[%c0, %c0_1] : memref<128x128xf32, #tpu.memory_space<vmem>>, vector<128x128xf32>
    %4 = arith.truncf %3 : vector<128x128xf32> to vector<128x128xbf16>
    %c128_i32 = arith.constant 128 : i32
    %5 = arith.muli %arg1, %c128_i32 : i32
    %6 = tpu.assume_multiple %5, 128 : i32
    %7 = arith.index_cast %6 : i32 to index
    %c0_2 = arith.constant 0 : index
    %8 = vector.load %arg3[%7, %c0_2] : memref<128x64xbf16, #tpu.memory_space<vmem>>, vector<128x64xbf16>
    %c0_3 = arith.constant 0 : index
    %c0_4 = arith.constant 0 : index
    %9 = vector.load %arg7[%c0_3, %c0_4] : memref<128x64xf32, #tpu.memory_space<vmem>>, vector<128x64xf32>
    %cst = arith.constant dense<0.000000e+00> : vector<128x64xf32>
    %10 = tpu.matmul %4, %8, %cst {dimension_numbers = #tpu.dot_dimension_numbers<[1], [0], [0], [1], [0, 0, 1, 1], [], []>} : vector<128x128xbf16>, vector<128x64xbf16>, vector<128x64xf32> -> vector<128x64xf32>
    %11 = arith.addf %9, %10 : vector<128x64xf32>
    %c0_5 = arith.constant 0 : index
    %c0_6 = arith.constant 0 : index
    %12 = vector.load %arg7[%c0_5, %c0_6] : memref<128x64xf32, #tpu.memory_space<vmem>>, vector<128x64xf32>
    tpu.vector_store %arg7[%c0_5, %c0_6], %11 {strides = array<i32>} : memref<128x64xf32, #tpu.memory_space<vmem>>, vector<128x64xf32>,
    %c0_i32_7 = arith.constant 0 : i32
    %13 = arith.cmpi eq, %arg1, %c0_i32_7 : i32
    %14 = arith.extui %13 : i1 to i32
    %c0_i32_8 = arith.constant 0 : i32
    %15 = arith.cmpi ne, %14, %c0_i32_8 : i32
    scf.if %15 {
      %c0_9 = arith.constant 0 : index
      %c0_10 = arith.constant 0 : index
      %16 = vector.load %arg7[%c0_9, %c0_10] : memref<128x64xf32, #tpu.memory_space<vmem>>, vector<128x64xf32>
      %c0_11 = arith.constant 0 : index
      %c0_12 = arith.constant 0 : index
      %17 = vector.load %arg4[%c0_11, %c0_12] : memref<64x128xf32, #tpu.memory_space<vmem>>, vector<64x128xf32>
      %cst_13 = arith.constant dense<0.000000e+00> : vector<128x128xf32>
      %18 = tpu.matmul %16, %17, %cst_13 {dimension_numbers = #tpu.dot_dimension_numbers<[1], [0], [0], [1], [0, 0, 1, 1], [], []>} : vector<128x64xf32>, vector<64x128xf32>, vector<128x128xf32> -> vector<128x128xf32>
      %c0_14 = arith.constant 0 : index
      %c0_15 = arith.constant 0 : index
      %19 = vector.load %arg5[%c0_14, %c0_15] : memref<1x128xf32, #tpu.memory_space<vmem>>, vector<1x128xf32>
      %20 = vector.broadcast %19 : vector<1x128xf32> to vector<128x128xf32>
      %21 = arith.addf %18, %20 : vector<128x128xf32>
      %cst_16 = arith.constant 0.000000e+00 : f32
      %22 = vector.broadcast %cst_16 : f32 to vector<128x128xf32>
      %23 = arith.maximumf %21, %22 : vector<128x128xf32>
      %c0_17 = arith.constant 0 : index
      %c0_18 = arith.constant 0 : index
      %24 = vector.load %arg6[%c0_17, %c0_18] : memref<128x128xf32, #tpu.memory_space<vmem>>, vector<128x128xf32>
      tpu.vector_store %arg6[%c0_17, %c0_18], %23 {strides = array<i32>} : memref<128x128xf32, #tpu.memory_space<vmem>>, vector<128x128xf32>,
    } else {
    }
    return
  }
  func.func @transform_0(%arg0: i32, %arg1: i32) -> (i32, i32) {
    %c0_i32 = arith.constant 0 : i32
    return %arg0, %arg1 : i32, i32
  }
  func.func @transform_1(%arg0: i32, %arg1: i32) -> (i32, i32) {
    %c0_i32 = arith.constant 0 : i32
    %c0_i32_0 = arith.constant 0 : i32
    %c0_i32_1 = arith.constant 0 : i32
    return %c0_i32, %c0_i32_0 : i32, i32
  }
  func.func @transform_2(%arg0: i32, %arg1: i32) -> (i32, i32) {
    %c0_i32 = arith.constant 0 : i32
    %c0_i32_0 = arith.constant 0 : i32
    %c0_i32_1 = arith.constant 0 : i32
    return %c0_i32, %c0_i32_0 : i32, i32
  }
  func.func @transform_3(%arg0: i32, %arg1: i32) -> (i32, i32) {
    %c0_i32 = arith.constant 0 : i32
    %c0_i32_0 = arith.constant 0 : i32
    %c0_i32_1 = arith.constant 0 : i32
    return %c0_i32, %c0_i32_0 : i32, i32
  }
  func.func @transform_4(%arg0: i32, %arg1: i32) -> (i32, i32) {
    %c0_i32 = arith.constant 0 : i32
    %c0_i32_0 = arith.constant 0 : i32
    return %arg0, %c0_i32 : i32, i32
  }
}

</mosaic_0001>

<bundles_post_ra>
// kernel: tpu_custom_call.1
= control target key start
LH: loop header
LB: loop body
LE: loop exit
PB: predicated region body
PF: predicated region fallthrough
CT: control target
= control target key end

     0   :  { %9 = vsyncpa [#allocation4], 0  ;;  %s924_s0 = inlined_call_operand.hbm [shape: f32[128,128], index: 0, kind: input, shape index: {}]   ;;  %s925_s1 = inlined_call_operand.vmem [shape: bf16[128,64], index: 1, kind: input, shape index: {}]   ;;  %s926_s2 = inlined_call_operand.vmem [shape: f32[64,128], index: 2, kind: input, shape index: {}]   ;;  %s927_s3 = inlined_call_operand.vmem [shape: f32[1,128], index: 3, kind: input, shape index: {}]   ;;  %s928_s4 = inlined_call_operand.hbm [shape: f32[128,128], index: 4, kind: output, shape index: {}]  }
   0x1   :  { %10 = vsyncpa [#allocation5], 0  ;;  %s765_s15 = smov [#allocation3]  }
   0x2   :  { %s16_s16 = sshll.u32 %s765_s15, 4  ;;  %s17_s16 = int_to_ptr.vmem [resolvable:$true] %s16_s16 }
   0x3   :  { %s729_s17 = scalar_lea.vmem %s17_s16, 2048  ;;  %p734_p1 = scmp.lt.s32.totalorder %s17_s16, %s17_s16 }
   0x4   :  { %p730_p0 = scmp.ne.s32.totalorder %s17_s16, %s729_s17  ;;  %p735_p2 = scmp.lt.s32.totalorder %s729_s17, %s729_s17 }
   0x6   :  { %p736_p3 = por %p735_p2, %p734_p1 }
   0x8   :  { %p737_p4 = pnand %p736_p3, %p730_p0 }
   0xa   :  { %740 = shalt.err (!%p737_p4)
}
   0xb   :  { %s766_s18 = smov 128   ;;  %s767_s19 = smov 8  }
   0xc   :  { %22 = dma.hbm_to_vmem [thread:$0]  %s924_s0, 2048, %s17_s16, [#allocation4], %s766_s18, %s766_s18, %s767_s19  }
   0xd   :  { %761 = dma.done.wait [#allocation4], 2048  }
   0xe   :  { %762 = vsyncadd [#allocation4], 4294965248  ;;  %vm37_vm0 = vcmask 523264   ;;  %v768_v0 = vmov 0.0   ;;  %v713_v1 = vld [vmem:[%s925_s1 + $0x38] sm:$0xff]   ;;  %v714_v2 = vld [vmem:[%s925_s1 + $0x30] sm:$0xff]  }
   0xf   :  { %40 = vst.msk [vmem:[#allocation2 + $0x10] sm:$0xff] %vm37_vm0, %v768_v0  ;;  %38 = vst.msk [vmem:[#allocation2] sm:$0xff] %vm37_vm0, %v768_v0  ;;  %636 = vmatprep.subr.bf16.mxu0 %v713_v1  ;;  %v715_v3 = vld [vmem:[%s925_s1 + $0x28] sm:$0xff]   ;;  %v716_v4 = vld [vmem:[%s925_s1 + $0x20] sm:$0xff]  }
  0x10   :  { %39 = vst.msk [vmem:[#allocation2 + $0x8] sm:$0xff] %vm37_vm0, %v768_v0  ;;  %41 = vst.msk [vmem:[#allocation2 + $0x18] sm:$0xff] %vm37_vm0, %v768_v0  ;;  %637 = vmatpush3.bf16.msra.mxu0 %v713_v1  ;;  %v54_v5 = vld [vmem:[#allocation3] sm:$0xff]  ;;  %v55_v6 = vld [vmem:[#allocation3 + $0x8] sm:$0xff] }
  0x11   :  { %42 = vst.msk [vmem:[#allocation2 + $0x20] sm:$0xff] %vm37_vm0, %v768_v0  ;;  %43 = vst.msk [vmem:[#allocation2 + $0x28] sm:$0xff] %vm37_vm0, %v768_v0  ;;  %638 = vmatprep.subr.bf16.mxu0 %v714_v2  ;;  %v70_v7 = vpack.c.bf16 %v55_v6, %v54_v5  ;;  %v717_v8 = vld [vmem:[%s925_s1 + $0x18] sm:$0xff]   ;;  %v718_v9 = vld [vmem:[%s925_s1 + $0x10] sm:$0xff]  }
  0x12   :  { %44 = vst.msk [vmem:[#allocation2 + $0x30] sm:$0xff] %vm37_vm0, %v768_v0  ;;  %45 = vst.msk [vmem:[#allocation2 + $0x38] sm:$0xff] %vm37_vm0, %v768_v0  ;;  %v719_v10 = vld [vmem:[%s925_s1 + $0x8] sm:$0xff]   ;;  %v720_v11 = vld [vmem:[%s925_s1] sm:$0xff]  }
  0x13   :  { %46 = vst.msk [vmem:[#allocation2 + $0x40] sm:$0xff] %vm37_vm0, %v768_v0  ;;  %47 = vst.msk [vmem:[#allocation2 + $0x48] sm:$0xff] %vm37_vm0, %v768_v0  ;;  %652 = vmatprep.mubr.bf16.mxu0 %v70_v7  ;;  %v56_v12 = vld [vmem:[#allocation3 + $0x10] sm:$0xff]  ;;  %v57_v13 = vld [vmem:[#allocation3 + $0x18] sm:$0xff] }
  0x14   :  { %48 = vst.msk [vmem:[#allocation2 + $0x50] sm:$0xff] %vm37_vm0, %v768_v0  ;;  %49 = vst.msk [vmem:[#allocation2 + $0x58] sm:$0xff] %vm37_vm0, %v768_v0  ;;  %639 = vmatpush3.bf16.msra.mxu0 %v714_v2  ;;  %v58_v14 = vld [vmem:[#allocation3 + $0x20] sm:$0xff]  ;;  %v59_v15 = vld [vmem:[#allocation3 + $0x28] sm:$0xff]  ;;  %v71_v16 = vpack.c.bf16 %v57_v13, %v56_v12 }
  0x15   :  { %50 = vst.msk [vmem:[#allocation2 + $0x60] sm:$0xff] %vm37_vm0, %v768_v0  ;;  %51 = vst.msk [vmem:[#allocation2 + $0x68] sm:$0xff] %vm37_vm0, %v768_v0  ;;  %640 = vmatprep.subr.bf16.mxu0 %v715_v3  ;;  %v72_v17 = vpack.c.bf16 %v59_v15, %v58_v14  ;;  %v60_v18 = vld [vmem:[#allocation3 + $0x30] sm:$0xff]  ;;  %v61_v19 = vld [vmem:[#allocation3 + $0x38] sm:$0xff] }
  0x16   :  { %52 = vst.msk [vmem:[#allocation2 + $0x70] sm:$0xff] %vm37_vm0, %v768_v0  ;;  %53 = vst.msk [vmem:[#allocation2 + $0x78] sm:$0xff] %vm37_vm0, %v768_v0  ;;  %v62_v20 = vld [vmem:[#allocation3 + $0x40] sm:$0xff]  ;;  %v63_v21 = vld [vmem:[#allocation3 + $0x48] sm:$0xff]  ;;  %v73_v22 = vpack.c.bf16 %v61_v19, %v60_v18 }
  0x17   :  { %v74_v23 = vpack.c.bf16 %v63_v21, %v62_v20  ;;  %v64_v24 = vld [vmem:[#allocation3 + $0x50] sm:$0xff]  ;;  %v65_v25 = vld [vmem:[#allocation3 + $0x58] sm:$0xff]  ;;  %v66_v26 = vld [vmem:[#allocation3 + $0x60] sm:$0xff] }
  0x18   :  { %641 = vmatpush3.bf16.msra.mxu0 %v715_v3  ;;  %v67_v27 = vld [vmem:[#allocation3 + $0x68] sm:$0xff]  ;;  %v75_v28 = vpack.c.bf16 %v65_v25, %v64_v24  ;;  %v68_v30 = vld [vmem:[#allocation3 + $0x70] sm:$0xff]  ;;  %v69_v31 = vld [vmem:[#allocation3 + $0x78] sm:$0xff] }
  0x19   :  { %642 = vmatprep.subr.bf16.mxu0 %v716_v4  ;;  %v76_v29 = vpack.c.bf16 %v67_v27, %v66_v26  ;;  %v77_v32 = vpack.c.bf16 %v69_v31, %v68_v30  ;;  %v319_v33 = vld [vmem:[%s926_s2 + $0x38] sm:$0xff]  ;;  %v318_v34 = vld [vmem:[%s926_s2 + $0x30] sm:$0xff]  ;;  %v317_v35 = vld [vmem:[%s926_s2 + $0x28] sm:$0xff] }
  0x1a   :  { %668 = vmatprep.subr.mxu1 %v319_v33  ;;  %v316_v36 = vld [vmem:[%s926_s2 + $0x20] sm:$0xff]  ;;  %v315_v37 = vld [vmem:[%s926_s2 + $0x18] sm:$0xff]  ;;  %v314_v38 = vld [vmem:[%s926_s2 + $0x10] sm:$0xff] }
  0x1b   :  { %669 = vmatpush3.msra.mxu1 %v319_v33  ;;  %v313_v39 = vld [vmem:[%s926_s2 + $0x8] sm:$0xff]  ;;  %v312_v40 = vld [vmem:[%s926_s2] sm:$0xff]  ;;  %v101_v41 = vld [vmem:[#allocation2 + $0x10] sm:$0xff] }
  0x1c   :  { %643 = vmatpush3.bf16.msra.mxu0 %v716_v4  ;;  %670 = vmatprep.subr.mxu1 %v318_v34  ;;  %v99_v43 = vld [vmem:[#allocation2] sm:$0xff]  ;;  %v102_v46 = vld [vmem:[#allocation2 + $0x18] sm:$0xff]  ;;  %v100_v49 = vld [vmem:[#allocation2 + $0x8] sm:$0xff] }
  0x1d   :  { %644 = vmatprep.subr.bf16.mxu0 %v717_v8  ;;  %671 = vmatpush3.msra.mxu1 %v318_v34  ;;  %v105_v52 = vld [vmem:[#allocation2 + $0x30] sm:$0xff]  ;;  %v103_v55 = vld [vmem:[#allocation2 + $0x20] sm:$0xff]  ;;  %v106_v58 = vld [vmem:[#allocation2 + $0x38] sm:$0xff] }
  0x1e   :  { %672 = vmatprep.subr.mxu1 %v317_v35  ;;  %v104_v62 = vld [vmem:[#allocation2 + $0x28] sm:$0xff]  ;;  %v109_v1 = vld [vmem:[#allocation2 + $0x50] sm:$0xff]  ;;  %v107_v5 = vld [vmem:[#allocation2 + $0x40] sm:$0xff] }
  0x1f   :  { %673 = vmatpush3.msra.mxu1 %v317_v35  ;;  %v108_v13 = vld [vmem:[#allocation2 + $0x48] sm:$0xff]  ;;  %v111_v21 = vld [vmem:[#allocation2 + $0x60] sm:$0xff]  ;;  %v114_v25 = vld [vmem:[#allocation2 + $0x78] sm:$0xff] }
  0x20   :  { %645 = vmatpush3.bf16.msra.mxu0 %v717_v8  ;;  %674 = vmatprep.subr.mxu1 %v316_v36 }
  0x21   :  { %646 = vmatprep.subr.bf16.mxu0 %v718_v9  ;;  %675 = vmatpush3.msra.mxu1 %v316_v36 }
  0x22   :  { %676 = vmatprep.subr.mxu1 %v315_v37 }
  0x23   :  { %677 = vmatpush3.msra.mxu1 %v315_v37 }
  0x24   :  { %647 = vmatpush3.bf16.msra.mxu0 %v718_v9  ;;  %678 = vmatprep.subr.mxu1 %v314_v38  ;;  %v110_v9 = vld [vmem:[#allocation2 + $0x58] sm:$0xff] }
  0x25   :  { %648 = vmatprep.subr.bf16.mxu0 %v719_v10  ;;  %679 = vmatpush3.msra.mxu1 %v314_v38 }
  0x26   :  { %680 = vmatprep.subr.mxu1 %v313_v39 }
  0x27   :  { %681 = vmatpush3.msra.mxu1 %v313_v39 }
  0x28   :  { %649 = vmatpush3.bf16.msra.mxu0 %v719_v10  ;;  %682 = vmatprep.subr.mxu1 %v312_v40 }
  0x29   :  { %650 = vmatprep.subr.bf16.mxu0 %v720_v11  ;;  %683 = vmatpush3.msra.mxu1 %v312_v40 }
  0x2c   :  { %651 = vmatpush3.bf16.msra.mxu0 %v720_v11 }
  0x2f   :  { %653 = vmatmul.mubr.bf16.vlgmr.msra.gmra.mxu0 %v71_v16 }
  0x30   :  { %656 = vmatprep.mubr.bf16.mxu0 %v72_v17  ;;  %v113_v17 = vld [vmem:[#allocation2 + $0x70] sm:$0xff] }
  0x37   :  { %657 = vmatmul.mubr.bf16.gmra.mxu0 %v73_v22 }
  0x38   :  { %660 = vmatprep.mubr.bf16.mxu0 %v74_v23 }
  0x3f   :  { %661 = vmatmul.mubr.bf16.gmra.mxu0 %v75_v28 }
  0x40   :  { %664 = vmatprep.mubr.bf16.mxu0 %v76_v29  ;;  %v112_v29 = vld [vmem:[#allocation2 + $0x68] sm:$0xff] }
  0x47   :  { %665 = vmatmul.mubr.bf16.gmra.mxu0 %v77_v32 }
  0xef   :  { %v654_v42 = vpop.f32.mrf.mxu0 }
  0xf0   :  { %v262_v44 = vadd.f32 %v654_v42, %v101_v41  ;;  %v900_v41 = vld [vmem:[%s927_s3] ss:$0 sm:$0xff]  ;;  %s769_s3 = smov [#allocation6]  }
  0xf1   :  { %v197_v45 = vpop.f32.mrf.mxu0  ;;  %s557_s28 = sshll.u32 %s769_s3, 4  ;;  %s558_s28 = int_to_ptr.vmem [resolvable:$true] %s557_s28 }
  0xf2   :  { %279 = vst.msk [vmem:[#allocation2 + $0x10] sm:$0xff] %vm37_vm0, %v262_v44  ;;  %v260_v47 = vadd.f32 %v197_v45, %v99_v43  ;;  %s741_s29 = scalar_lea.vmem %s558_s28, 2048  ;;  %p746_p6 = scmp.lt.s32.totalorder %s558_s28, %s558_s28 }
  0xf3   :  { %v655_v48 = vpop.f32.mrf.mxu0  ;;  %p742_p5 = scmp.ne.s32.totalorder %s558_s28, %s741_s29  ;;  %p747_p7 = scmp.lt.s32.totalorder %s741_s29, %s741_s29 }
  0xf4   :  { %277 = vst.msk [vmem:[#allocation2] sm:$0xff] %vm37_vm0, %v260_v47  ;;  %v263_v50 = vadd.f32 %v655_v48, %v102_v46 }
  0xf5   :  { %v200_v51 = vpop.f32.mrf.mxu0  ;;  %p748_p8 = por %p747_p7, %p746_p6 }
  0xf6   :  { %280 = vst.msk [vmem:[#allocation2 + $0x18] sm:$0xff] %vm37_vm0, %v263_v50  ;;  %v261_v53 = vadd.f32 %v200_v51, %v100_v49 }
  0xf7   :  { %v658_v54 = vpop.f32.mrf.mxu0  ;;  %p749_p9 = pnand %p748_p8, %p742_p5 }
  0xf8   :  { %278 = vst.msk [vmem:[#allocation2 + $0x8] sm:$0xff] %vm37_vm0, %v261_v53  ;;  %v266_v56 = vadd.f32 %v658_v54, %v105_v52 }
  0xf9   :  { %v213_v57 = vpop.f32.mrf.mxu0  ;;  %v298_v7 = vld [vmem:[#allocation2 + $0x10] sm:$0xff] }
  0xfa   :  { %283 = vst.msk [vmem:[#allocation2 + $0x30] sm:$0xff] %vm37_vm0, %v266_v56  ;;  %v264_v59 = vadd.f32 %v213_v57, %v103_v55 }
  0xfb   :  { %v659_v60 = vpop.f32.mrf.mxu0  ;;  %v296_v61 = vld [vmem:[#allocation2] sm:$0xff] }
  0xfc   :  { %281 = vst.msk [vmem:[#allocation2 + $0x20] sm:$0xff] %vm37_vm0, %v264_v59  ;;  %v267_v63 = vadd.f32 %v659_v60, %v106_v58  ;;  %684 = vmatprep.mubr.msk.f32.mxu1 %vm37_vm0, %v296_v61 }
  0xfd   :  { %v216_v0 = vpop.f32.mrf.mxu0  ;;  %v299_v12 = vld [vmem:[#allocation2 + $0x18] sm:$0xff] }
  0xfe   :  { %284 = vst.msk [vmem:[#allocation2 + $0x38] sm:$0xff] %vm37_vm0, %v267_v63  ;;  %v265_v2 = vadd.f32 %v216_v0, %v104_v62 }
  0xff   :  { %v662_v3 = vpop.f32.mrf.mxu0  ;;  %v297_v4 = vld [vmem:[#allocation2 + $0x8] sm:$0xff] }
 0x100   :  { %282 = vst.msk [vmem:[#allocation2 + $0x28] sm:$0xff] %vm37_vm0, %v265_v2  ;;  %v270_v6 = vadd.f32 %v662_v3, %v109_v1  ;;  %685 = vmatmul.mubr.msk.f32.vlgmr.msra.gmra.mxu1 %vm37_vm0, %v297_v4 }
 0x101   :  { %v229_v8 = vpop.f32.mrf.mxu0  ;;  %687 = vmatprep.mubr.msk.f32.mxu1 %vm37_vm0, %v298_v7  ;;  %v302_v23 = vld [vmem:[#allocation2 + $0x30] sm:$0xff] }
 0x102   :  { %287 = vst.msk [vmem:[#allocation2 + $0x50] sm:$0xff] %vm37_vm0, %v270_v6  ;;  %v268_v10 = vadd.f32 %v229_v8, %v107_v5 }
 0x103   :  { %v663_v11 = vpop.f32.mrf.mxu0  ;;  %v300_v14 = vld [vmem:[#allocation2 + $0x20] sm:$0xff] }
 0x104   :  { %285 = vst.msk [vmem:[#allocation2 + $0x40] sm:$0xff] %vm37_vm0, %v268_v10  ;;  %v271_v15 = vadd.f32 %v663_v11, %v110_v9  ;;  %688 = vmatmul.mubr.msk.f32.gmra.mxu1 %vm37_vm0, %v299_v12 }
 0x105   :  { %v232_v16 = vpop.f32.mrf.mxu0  ;;  %690 = vmatprep.mubr.msk.f32.mxu1 %vm37_vm0, %v300_v14  ;;  %v303_v28 = vld [vmem:[#allocation2 + $0x38] sm:$0xff] }
 0x106   :  { %288 = vst.msk [vmem:[#allocation2 + $0x58] sm:$0xff] %vm37_vm0, %v271_v15  ;;  %v269_v18 = vadd.f32 %v232_v16, %v108_v13 }
 0x107   :  { %v666_v19 = vpop.f32.mrf.mxu0  ;;  %v301_v20 = vld [vmem:[#allocation2 + $0x28] sm:$0xff] }
 0x108   :  { %286 = vst.msk [vmem:[#allocation2 + $0x48] sm:$0xff] %vm37_vm0, %v269_v18  ;;  %v274_v22 = vadd.f32 %v666_v19, %v113_v17  ;;  %691 = vmatmul.mubr.msk.f32.gmra.mxu1 %vm37_vm0, %v301_v20 }
 0x109   :  { %v245_v24 = vpop.f32.mrf.mxu0  ;;  %693 = vmatprep.mubr.msk.f32.mxu1 %vm37_vm0, %v302_v23  ;;  %v306_v35 = vld [vmem:[#allocation2 + $0x50] sm:$0xff] }
 0x10a   :  { %291 = vst.msk [vmem:[#allocation2 + $0x70] sm:$0xff] %vm37_vm0, %v274_v22  ;;  %v272_v26 = vadd.f32 %v245_v24, %v111_v21 }
 0x10b   :  { %v667_v27 = vpop.f32.mrf.mxu0  ;;  %v304_v30 = vld [vmem:[#allocation2 + $0x40] sm:$0xff] }
 0x10c   :  { %289 = vst.msk [vmem:[#allocation2 + $0x60] sm:$0xff] %vm37_vm0, %v272_v26  ;;  %v275_v31 = vadd.f32 %v667_v27, %v114_v25  ;;  %694 = vmatmul.mubr.msk.f32.gmra.mxu1 %vm37_vm0, %v303_v28 }
 0x10d   :  { %v248_v32 = vpop.f32.mrf.mxu0  ;;  %696 = vmatprep.mubr.msk.f32.mxu1 %vm37_vm0, %v304_v30  ;;  %v307_v36 = vld [vmem:[#allocation2 + $0x58] sm:$0xff] }
 0x10e   :  { %292 = vst.msk [vmem:[#allocation2 + $0x78] sm:$0xff] %vm37_vm0, %v275_v31  ;;  %v273_v33 = vadd.f32 %v248_v32, %v112_v29 }
 0x10f   :  { %v305_v34 = vld [vmem:[#allocation2 + $0x48] sm:$0xff] }
 0x110   :  { %290 = vst.msk [vmem:[#allocation2 + $0x68] sm:$0xff] %vm37_vm0, %v273_v33  ;;  %697 = vmatmul.mubr.msk.f32.gmra.mxu1 %vm37_vm0, %v305_v34 }
 0x111   :  { %699 = vmatprep.mubr.msk.f32.mxu1 %vm37_vm0, %v306_v35  ;;  %v310_v39 = vld [vmem:[#allocation2 + $0x70] sm:$0xff] }
 0x113   :  { %v308_v37 = vld [vmem:[#allocation2 + $0x60] sm:$0xff] }
 0x114   :  { %700 = vmatmul.mubr.msk.f32.gmra.mxu1 %vm37_vm0, %v307_v36 }
 0x115   :  { %702 = vmatprep.mubr.msk.f32.mxu1 %vm37_vm0, %v308_v37  ;;  %v311_v40 = vld [vmem:[#allocation2 + $0x78] sm:$0xff] }
 0x117   :  { %v309_v38 = vld [vmem:[#allocation2 + $0x68] sm:$0xff] }
 0x118   :  { %703 = vmatmul.mubr.msk.f32.gmra.mxu1 %vm37_vm0, %v309_v38 }
 0x119   :  { %705 = vmatprep.mubr.msk.f32.mxu1 %vm37_vm0, %v310_v39 }
 0x11c   :  { %706 = vmatmul.mubr.msk.f32.gmra.mxu1 %vm37_vm0, %v311_v40 }
 0x1c0   :  { %v686_v42 = vpop.f32.mrf.mxu1 }
 0x1c1   :  { %v447_v43 = vadd.f32 %v686_v42, %v900_v41 }
 0x1c2   :  { %v441_v44 = vpop.f32.mrf.mxu1 }
 0x1c3   :  { %v521_v45 = vmax.f32 %v447_v43, 0.0  ;;  %v442_v46 = vadd.f32 %v900_v41, %v441_v44 }
 0x1c4   :  { %v689_v47 = vpop.f32.mrf.mxu1 }
 0x1c5   :  { %537 = vst [vmem:[#allocation6 + $0x8] sm:$0xff] %v521_v45  ;;  %v520_v48 = vmax.f32 %v442_v46, 0.0  ;;  %v457_v49 = vadd.f32 %v689_v47, %v900_v41 }
 0x1c6   :  { %v451_v50 = vpop.f32.mrf.mxu1 }
 0x1c7   :  { %536 = vst [vmem:[#allocation6] sm:$0xff] %v520_v48  ;;  %v523_v51 = vmax.f32 %v457_v49, 0.0  ;;  %v452_v52 = vadd.f32 %v900_v41, %v451_v50 }
 0x1c8   :  { %v692_v53 = vpop.f32.mrf.mxu1 }
 0x1c9   :  { %539 = vst [vmem:[#allocation6 + $0x18] sm:$0xff] %v523_v51  ;;  %v522_v54 = vmax.f32 %v452_v52, 0.0  ;;  %v467_v55 = vadd.f32 %v692_v53, %v900_v41 }
 0x1ca   :  { %v461_v56 = vpop.f32.mrf.mxu1 }
 0x1cb   :  { %538 = vst [vmem:[#allocation6 + $0x10] sm:$0xff] %v522_v54  ;;  %v525_v57 = vmax.f32 %v467_v55, 0.0  ;;  %v462_v58 = vadd.f32 %v900_v41, %v461_v56 }
 0x1cc   :  { %v695_v59 = vpop.f32.mrf.mxu1 }
 0x1cd   :  { %541 = vst [vmem:[#allocation6 + $0x28] sm:$0xff] %v525_v57  ;;  %v524_v60 = vmax.f32 %v462_v58, 0.0  ;;  %v477_v61 = vadd.f32 %v695_v59, %v900_v41 }
 0x1ce   :  { %v471_v62 = vpop.f32.mrf.mxu1 }
 0x1cf   :  { %540 = vst [vmem:[#allocation6 + $0x20] sm:$0xff] %v524_v60  ;;  %v527_v63 = vmax.f32 %v477_v61, 0.0  ;;  %v472_v0 = vadd.f32 %v900_v41, %v471_v62 }
 0x1d0   :  { %v698_v1 = vpop.f32.mrf.mxu1 }
 0x1d1   :  { %543 = vst [vmem:[#allocation6 + $0x38] sm:$0xff] %v527_v63  ;;  %v526_v2 = vmax.f32 %v472_v0, 0.0  ;;  %v487_v3 = vadd.f32 %v698_v1, %v900_v41 }
 0x1d2   :  { %v481_v4 = vpop.f32.mrf.mxu1 }
 0x1d3   :  { %542 = vst [vmem:[#allocation6 + $0x30] sm:$0xff] %v526_v2  ;;  %v529_v5 = vmax.f32 %v487_v3, 0.0  ;;  %v482_v6 = vadd.f32 %v900_v41, %v481_v4 }
 0x1d4   :  { %v701_v7 = vpop.f32.mrf.mxu1 }
 0x1d5   :  { %545 = vst [vmem:[#allocation6 + $0x48] sm:$0xff] %v529_v5  ;;  %v528_v8 = vmax.f32 %v482_v6, 0.0  ;;  %v497_v9 = vadd.f32 %v701_v7, %v900_v41 }
 0x1d6   :  { %v491_v10 = vpop.f32.mrf.mxu1 }
 0x1d7   :  { %544 = vst [vmem:[#allocation6 + $0x40] sm:$0xff] %v528_v8  ;;  %v531_v11 = vmax.f32 %v497_v9, 0.0  ;;  %v492_v12 = vadd.f32 %v900_v41, %v491_v10 }
 0x1d8   :  { %v704_v13 = vpop.f32.mrf.mxu1 }
 0x1d9   :  { %547 = vst [vmem:[#allocation6 + $0x58] sm:$0xff] %v531_v11  ;;  %v530_v14 = vmax.f32 %v492_v12, 0.0  ;;  %v507_v15 = vadd.f32 %v704_v13, %v900_v41 }
 0x1da   :  { %v501_v16 = vpop.f32.mrf.mxu1 }
 0x1db   :  { %546 = vst [vmem:[#allocation6 + $0x50] sm:$0xff] %v530_v14  ;;  %v533_v17 = vmax.f32 %v507_v15, 0.0  ;;  %v502_v18 = vadd.f32 %v900_v41, %v501_v16 }
 0x1dc   :  { %v707_v19 = vpop.f32.mrf.mxu1 }
 0x1dd   :  { %549 = vst [vmem:[#allocation6 + $0x68] sm:$0xff] %v533_v17  ;;  %v532_v20 = vmax.f32 %v502_v18, 0.0  ;;  %v517_v21 = vadd.f32 %v707_v19, %v900_v41 }
 0x1de   :  { %v511_v22 = vpop.f32.mrf.mxu1 }
 0x1df   :  { %548 = vst [vmem:[#allocation6 + $0x60] sm:$0xff] %v532_v20  ;;  %v535_v23 = vmax.f32 %v517_v21, 0.0  ;;  %v512_v24 = vadd.f32 %v900_v41, %v511_v22 }
 0x1e1   :  { %551 = vst [vmem:[#allocation6 + $0x78] sm:$0xff] %v535_v23  ;;  %v534_v25 = vmax.f32 %v512_v24, 0.0 }
 0x1e3   :  { %550 = vst [vmem:[#allocation6 + $0x70] sm:$0xff] %v534_v25 }
 0x1e4   :  { %752 = shalt.err (!%p749_p9)
}
 0x1e5   :  { %563 = dma.vmem_to_hbm [thread:$0]  %s558_s28, 2048, %s928_s4, [#allocation5], %s766_s18, %s766_s18, %s767_s19  }
 0x1e6   :  { %763 = dma.done.wait [#allocation5], 2048  }
 0x1e7   :  { %764 = vsyncadd [#allocation5], 4294965248 }
 0x1e8   :  { %567 = vsyncpa [#allocation4], 1 }
 0x1e9   :  { %568 = vsyncpa [#allocation5], 1 }

</bundles_post_ra>
